<compile_context>
chip_gen: v5e
topology: v5e:2x2
jax: 0.10.0
libtpu: 0.0.40
codegen_flags: <defaults>
</compile_context>

<pallas_src>
import functools

import jax
import jax.numpy as jnp
from jax.experimental import pallas as pl
from jax.experimental.pallas import tpu as pltpu

_NEG_BIG = -1e30


def _round_up(x, m):
    return (x + m - 1) // m * m


def reaction_mapper_kernel(idx_ref, feats_ref,
                           w1_ref, b1_ref, w2r_ref, b2_ref,
                           wt_ref, bt_ref,
                           out_ref,
                           m_sc, s_sc, acc_sc,
                           *, mxu_dtype):
    e_step = pl.program_id(0)

    @pl.when(e_step == 0)
    def _init():
        m_sc[...] = jnp.full(m_sc.shape, _NEG_BIG, jnp.float32)
        s_sc[...] = jnp.zeros(s_sc.shape, jnp.float32)
        acc_sc[...] = jnp.zeros(acc_sc.shape, jnp.float32)

    feats = feats_ref[...]                                      # [TE, H] mxu dtype

    # transform_nn: Linear(H, H) -> ReLU   (MXU, f32 accumulate)
    t = jnp.maximum(
        jnp.dot(feats, wt_ref[...], preferred_element_type=jnp.float32)
        + bt_ref[...], 0.0)                                     # [TE, H] f32

    # gate_nn: Linear(H, H//2) -> ReLU -> Linear(H//2, 1)
    h1 = jnp.maximum(
        jnp.dot(feats, w1_ref[...], preferred_element_type=jnp.float32)
        + b1_ref[...], 0.0)                                     # [TE, H//2] f32
    # Second gate linear (out_features=1): VPU multiply + lane reduce instead
    # of a degenerate N=1 MXU matmul.
    gate_col = (jnp.sum(h1 * w2r_ref[...], axis=-1, keepdims=True)
                + b2_ref[...])                                  # [TE, 1] f32

    TR = out_ref.shape[0]
    TE = feats.shape[0]

    idx_row = idx_ref[...]                                      # [1, TE] int32
    valid = idx_row < TR                                        # padded edges -> False
    # Lane-dense [1, TE] layout for the edge-scalar gate; padded lanes -> -BIG.
    gate_row = jnp.where(valid, gate_col.reshape(1, TE), _NEG_BIG)   # [1, TE]

    seg_ids = jax.lax.broadcasted_iota(jnp.int32, (TR, TE), 0)  # [TR, TE]
    one_hot = seg_ids == idx_row                                # [TR, TE] bool

    # Per-reaction max contributed by this tile (VALU select + lane reduce).
    masked_gate = jnp.where(one_hot, gate_row, _NEG_BIG)        # [TR, TE]
    tile_max = jnp.max(masked_gate, axis=1, keepdims=True)      # [TR, 1]

    # Online (streaming) segment-softmax statistics.
    m_old = m_sc[...]
    m_new = jnp.maximum(m_old, tile_max)                        # [TR, 1]
    corr = jnp.exp(m_old - m_new)                               # [TR, 1]  (R exps)

    # Gather each edge's running segment max back into lane layout so exp()
    # is only evaluated on [1, TE] (O(E) transcendentals, not O(R*E)).
    m_pe = jnp.max(jnp.where(one_hot, m_new, _NEG_BIG),
                   axis=0, keepdims=True)                       # [1, TE]
    e_pe = jnp.exp(jnp.minimum(gate_row - m_pe, 0.0))           # [1, TE], <= 1

    # Re-mask: rows with no edge in this tile (and padded edges) contribute 0.
    p = jnp.where(one_hot, e_pe, 0.0)                           # [TR, TE] f32

    s_sc[...] = corr * s_sc[...] + jnp.sum(p, axis=1, keepdims=True)
    # TODO(synk): exploit the block-diagonal structure of the sorted one-hot
    # (scalar-prefetched per-tile reaction windows + R tiling) to cut this
    # matmul / one-hot work from O(R*E*H) to O(E*TILE_R*H) when R is large.
    acc_sc[...] = corr * acc_sc[...] + jnp.dot(
        p.astype(mxu_dtype), t.astype(mxu_dtype),
        preferred_element_type=jnp.float32)                     # [TR, H]
    m_sc[...] = m_new

    @pl.when(e_step == pl.num_programs(0) - 1)
    def _finalize():
        denom = s_sc[...]
        safe = jnp.where(denom > 0.0, denom, 1.0)               # empty rows -> 0
        out_ref[...] = (acc_sc[...] / safe).astype(out_ref.dtype)


def reaction_mapper(metabolite_features, hyperedge_index, params, num_reactions,
                    *, compute_dtype=jnp.bfloat16, max_tile_e=512):
    """Sort/gather in plain JAX; matmuls + online segment softmax in Pallas."""
    rxn = hyperedge_index[1]
    sorted_idx = jnp.argsort(rxn)
    src = hyperedge_index[0][sorted_idx]
    # TODO(synk): fuse this gather into the kernel (scalar-prefetched src
    # indices + manual DMA) to avoid one extra [E, H] HBM round trip.
    feats = metabolite_features[src].astype(jnp.float32)        # [E, H]
    rxn_sorted = rxn[sorted_idx].astype(jnp.int32)

    E, H = feats.shape
    H2 = params["w1"].shape[1]

    # Lane/sublane-friendly padding.
    tile_e = min(max_tile_e, _round_up(max(E, 1), 128))
    E_pad = _round_up(max(E, 1), tile_e)
    R_pad = _round_up(max(num_reactions, 1), 8)

    feats_p = jnp.zeros((E_pad, H), jnp.float32).at[:E].set(feats)
    feats_p = feats_p.astype(compute_dtype)
    # Padded edges get a sentinel segment id that matches no output row.
    idx_p = jnp.full((1, E_pad), R_pad, jnp.int32).at[0, :E].set(rxn_sorted)

    w1 = params["w1"].astype(compute_dtype)
    wt = params["wt"].astype(compute_dtype)
    b1 = params["b1"].astype(jnp.float32)
    bt = params["bt"].astype(jnp.float32)
    w2r = params["w2"].reshape(1, H2).astype(jnp.float32)       # row layout for VPU
    b2 = params["b2"].reshape(1, 1).astype(jnp.float32)

    grid = (E_pad // tile_e,)

    flops = (2 * E_pad * H * H2 + 2 * E_pad * H * H + 2 * E_pad * H2
             + 2 * R_pad * E_pad * H + 8 * R_pad * E_pad)
    bytes_accessed = (feats_p.size * feats_p.dtype.itemsize
                      + idx_p.size * 4
                      + (w1.size + wt.size) * w1.dtype.itemsize
                      + (b1.size + bt.size + w2r.size + b2.size) * 4
                      + R_pad * H * 4)
    cost = pl.CostEstimate(flops=flops,
                           transcendentals=E_pad + 2 * R_pad * grid[0],
                           bytes_accessed=bytes_accessed)

    kernel = functools.partial(reaction_mapper_kernel, mxu_dtype=compute_dtype)

    out = pl.pallas_call(
        kernel,
        out_shape=jax.ShapeDtypeStruct((R_pad, H), jnp.float32),
        grid_spec=pltpu.PrefetchScalarGridSpec(
            num_scalar_prefetch=0,
            grid=grid,
            in_specs=[
                pl.BlockSpec((1, tile_e), lambda e: (0, e)),    # reaction ids
                pl.BlockSpec((tile_e, H), lambda e: (e, 0)),    # edge features
                pl.BlockSpec((H, H2), lambda e: (0, 0)),        # gate linear 1
                pl.BlockSpec((1, H2), lambda e: (0, 0)),
                pl.BlockSpec((1, H2), lambda e: (0, 0)),        # gate linear 2 (row)
                pl.BlockSpec((1, 1), lambda e: (0, 0)),
                pl.BlockSpec((H, H), lambda e: (0, 0)),         # transform linear
                pl.BlockSpec((1, H), lambda e: (0, 0)),
            ],
            out_specs=pl.BlockSpec((R_pad, H), lambda e: (0, 0)),
            scratch_shapes=[
                pltpu.VMEM((R_pad, 1), jnp.float32),            # running max
                pltpu.VMEM((R_pad, 1), jnp.float32),            # running sum
                pltpu.VMEM((R_pad, H), jnp.float32),            # Z accumulator
            ],
        ),
        compiler_params=pltpu.CompilerParams(
            dimension_semantics=("arbitrary",),
            vmem_limit_bytes=48 * 1024 * 1024,   # safe under v7x's 64 MiB VMEM
        ),
        cost_estimate=cost,
    )(idx_p, feats_p, w1, b1, w2r, b2, wt, bt)

    return out[:num_reactions]


def init_params(key, hidden):
    """Deterministic synthetic weights (shapes match the nn.Linear layers)."""
    k1, k2, k3 = jax.random.split(key, 3)
    h2 = hidden // 2
    scale = 0.1
    return {
        # gate_nn.0: Linear(hidden, hidden//2)   (stored [in, out])
        "w1": scale * jax.random.normal(k1, (hidden, h2), jnp.float32),
        "b1": jnp.zeros((1, h2), jnp.float32),
        # gate_nn.3: Linear(hidden//2, 1)
        "w2": scale * jax.random.normal(k2, (h2, 1), jnp.float32),
        "b2": jnp.zeros((1, 1), jnp.float32),
        # transform_nn.0: Linear(hidden, hidden)
        "wt": scale * jax.random.normal(k3, (hidden, hidden), jnp.float32),
        "bt": jnp.zeros((1, hidden), jnp.float32),
    }


def reference_jax(metabolite_features, hyperedge_index, params, num_reactions):
    """Pure-JAX (f32) reference for correctness checking."""
    rxn = hyperedge_index[1]
    sorted_idx = jnp.argsort(rxn)
    src = hyperedge_index[0][sorted_idx]
    feats = metabolite_features[src].astype(jnp.float32)
    idx = rxn[sorted_idx]

    h1 = jnp.maximum(feats @ params["w1"] + params["b1"], 0.0)
    gate = (h1 @ params["w2"] + params["b2"])[:, 0]
    t = jnp.maximum(feats @ params["wt"] + params["bt"], 0.0)

    seg_max = jax.ops.segment_max(gate, idx, num_segments=num_reactions)
    exp_g = jnp.exp(gate - seg_max[idx])
    seg_sum = jax.ops.segment_sum(exp_g, idx, num_segments=num_reactions)
    alpha = exp_g / seg_sum[idx]
    return jax.ops.segment_sum(alpha[:, None] * t, idx, num_segments=num_reactions)


if __name__ == "__main__":
    key = jax.random.PRNGKey(0)
    (k_feat, k_src, k_dst, k_param,
     k2_feat, k2_src, k2_dst) = jax.random.split(key, 7)

    hidden = 32
    params = init_params(k_param, hidden)

    # --- Case 1: tiny problem, single edge tile -----------------------------
    n_metabolites, n_reactions, n_edges = 16, 8, 16
    metabolite_features = jax.random.normal(
        k_feat, (n_metabolites, hidden), jnp.float32)
    src = jax.random.randint(k_src, (n_edges,), 0, n_metabolites, dtype=jnp.int32)
    dst = jax.random.randint(k_dst, (n_edges,), 0, n_reactions, dtype=jnp.int32)
    hyperedge_index = jnp.stack([src, dst], axis=0)               # [2, E]

    z_ref = reference_jax(metabolite_features, hyperedge_index, params, n_reactions)

    # f32 MXU path: tight check against the pure-JAX reference.
    z_f32 = reaction_mapper(metabolite_features, hyperedge_index, params,
                            n_reactions, compute_dtype=jnp.float32)
    jax.block_until_ready(z_f32)
    assert z_f32.shape == (n_reactions, hidden)
    assert jnp.allclose(z_f32, z_ref, atol=1e-4, rtol=1e-4)

    # bf16 MXU path (default perf path on v6e/v7x): looser tolerance.
    z_bf16 = reaction_mapper(metabolite_features, hyperedge_index, params,
                             n_reactions)
    jax.block_until_ready(z_bf16)
    assert z_bf16.shape == (n_reactions, hidden)
    assert jnp.allclose(z_bf16, z_ref, atol=3e-2, rtol=3e-2)

    # --- Case 2: multi-tile edge grid exercises the streaming softmax --------
    n_met2, n_rxn2, n_edge2 = 64, 24, 300
    feats2 = jax.random.normal(k2_feat, (n_met2, hidden), jnp.float32)
    src2 = jax.random.randint(k2_src, (n_edge2,), 0, n_met2, dtype=jnp.int32)
    dst2 = jax.random.randint(k2_dst, (n_edge2,), 0, n_rxn2, dtype=jnp.int32)
    hei2 = jnp.stack([src2, dst2], axis=0)

    z2_ref = reference_jax(feats2, hei2, params, n_rxn2)
    z2 = reaction_mapper(feats2, hei2, params, n_rxn2,
                         compute_dtype=jnp.float32, max_tile_e=128)
    jax.block_until_ready(z2)
    assert z2.shape == (n_rxn2, hidden)
    assert jnp.allclose(z2, z2_ref, atol=1e-4, rtol=1e-4)

    print("KERNEL_OK")
</pallas_src>

<mosaic_0001>
module attributes {stable_mosaic.version = 11 : i64} {
  func.func @reaction_mapper_kernel(%arg0: i32, %arg1: memref<1x128xi32, #tpu.memory_space<vmem>>, %arg2: memref<128x32xf32, #tpu.memory_space<vmem>>, %arg3: memref<32x16xf32, #tpu.memory_space<vmem>>, %arg4: memref<1x16xf32, #tpu.memory_space<vmem>>, %arg5: memref<1x16xf32, #tpu.memory_space<vmem>>, %arg6: memref<1x1xf32, #tpu.memory_space<vmem>>, %arg7: memref<32x32xf32, #tpu.memory_space<vmem>>, %arg8: memref<1x32xf32, #tpu.memory_space<vmem>>, %arg9: memref<8x32xf32, #tpu.memory_space<vmem>>, %arg10: memref<8x1xf32, #tpu.memory_space<vmem>>, %arg11: memref<8x1xf32, #tpu.memory_space<vmem>>, %arg12: memref<8x32xf32, #tpu.memory_space<vmem>>) attributes {dimension_semantics = [#tpu.dimension_semantics<arbitrary>], iteration_bounds = array<i64: 1>, scalar_prefetch = 0 : i64, scratch_operands = 3 : i64, tpu.core_type = #tpu.core_type<tc>, window_params = [{transform_indices = @transform_0, window_bounds = array<i64: 1, 128>}, {transform_indices = @transform_1, window_bounds = array<i64: 128, 32>}, {pipeline_mode = #tpu.pipeline_mode<synchronous>, transform_indices = @transform_2, window_bounds = array<i64: 32, 16>}, {pipeline_mode = #tpu.pipeline_mode<synchronous>, transform_indices = @transform_3, window_bounds = array<i64: 1, 16>}, {pipeline_mode = #tpu.pipeline_mode<synchronous>, transform_indices = @transform_4, window_bounds = array<i64: 1, 16>}, {pipeline_mode = #tpu.pipeline_mode<synchronous>, transform_indices = @transform_5, window_bounds = array<i64: 1, 1>}, {pipeline_mode = #tpu.pipeline_mode<synchronous>, transform_indices = @transform_6, window_bounds = array<i64: 32, 32>}, {pipeline_mode = #tpu.pipeline_mode<synchronous>, transform_indices = @transform_7, window_bounds = array<i64: 1, 32>}, {pipeline_mode = #tpu.pipeline_mode<synchronous>, transform_indices = @transform_8, window_bounds = array<i64: 8, 32>}]} {
    %c0_i32 = arith.constant 0 : i32
    %0 = arith.cmpi eq, %arg0, %c0_i32 : i32
    %1 = arith.extui %0 : i1 to i32
    %c0_i32_0 = arith.constant 0 : i32
    %2 = arith.cmpi ne, %1, %c0_i32_0 : i32
    scf.if %2 {
      %cst_43 = arith.constant -1.000000e+30 : f32
      %75 = vector.broadcast %cst_43 : f32 to vector<8x1xf32>
      %c0_44 = arith.constant 0 : index
      %c0_45 = arith.constant 0 : index
      %76 = vector.load %arg10[%c0_44, %c0_45] : memref<8x1xf32, #tpu.memory_space<vmem>>, vector<8x1xf32>
      tpu.vector_store %arg10[%c0_44, %c0_45], %75 {strides = array<i32>} : memref<8x1xf32, #tpu.memory_space<vmem>>, vector<8x1xf32>,
      %cst_46 = arith.constant 0.000000e+00 : f32
      %77 = vector.broadcast %cst_46 : f32 to vector<8x1xf32>
      %c0_47 = arith.constant 0 : index
      %c0_48 = arith.constant 0 : index
      %78 = vector.load %arg11[%c0_47, %c0_48] : memref<8x1xf32, #tpu.memory_space<vmem>>, vector<8x1xf32>
      tpu.vector_store %arg11[%c0_47, %c0_48], %77 {strides = array<i32>} : memref<8x1xf32, #tpu.memory_space<vmem>>, vector<8x1xf32>,
      %cst_49 = arith.constant 0.000000e+00 : f32
      %79 = vector.broadcast %cst_49 : f32 to vector<8x32xf32>
      %c0_50 = arith.constant 0 : index
      %c0_51 = arith.constant 0 : index
      %80 = vector.load %arg12[%c0_50, %c0_51] : memref<8x32xf32, #tpu.memory_space<vmem>>, vector<8x32xf32>
      tpu.vector_store %arg12[%c0_50, %c0_51], %79 {strides = array<i32>} : memref<8x32xf32, #tpu.memory_space<vmem>>, vector<8x32xf32>,
    } else {
    }
    %c0 = arith.constant 0 : index
    %c0_1 = arith.constant 0 : index
    %3 = vector.load %arg2[%c0, %c0_1] : memref<128x32xf32, #tpu.memory_space<vmem>>, vector<128x32xf32>
    %c0_2 = arith.constant 0 : index
    %c0_3 = arith.constant 0 : index
    %4 = vector.load %arg7[%c0_2, %c0_3] : memref<32x32xf32, #tpu.memory_space<vmem>>, vector<32x32xf32>
    %cst = arith.constant dense<0.000000e+00> : vector<128x32xf32>
    %5 = tpu.matmul %3, %4, %cst {dimension_numbers = #tpu.dot_dimension_numbers<[1], [0], [0], [1], [0, 0, 1, 1], [], []>} : vector<128x32xf32>, vector<32x32xf32>, vector<128x32xf32> -> vector<128x32xf32>
    %c0_4 = arith.constant 0 : index
    %c0_5 = arith.constant 0 : index
    %6 = vector.load %arg8[%c0_4, %c0_5] : memref<1x32xf32, #tpu.memory_space<vmem>>, vector<1x32xf32>
    %7 = vector.broadcast %6 : vector<1x32xf32> to vector<128x32xf32>
    %8 = arith.addf %5, %7 : vector<128x32xf32>
    %cst_6 = arith.constant 0.000000e+00 : f32
    %9 = vector.broadcast %cst_6 : f32 to vector<128x32xf32>
    %10 = arith.maximumf %8, %9 : vector<128x32xf32>
    %c0_7 = arith.constant 0 : index
    %c0_8 = arith.constant 0 : index
    %11 = vector.load %arg3[%c0_7, %c0_8] : memref<32x16xf32, #tpu.memory_space<vmem>>, vector<32x16xf32>
    %cst_9 = arith.constant dense<0.000000e+00> : vector<128x16xf32>
    %12 = tpu.matmul %3, %11, %cst_9 {dimension_numbers = #tpu.dot_dimension_numbers<[1], [0], [0], [1], [0, 0, 1, 1], [], []>} : vector<128x32xf32>, vector<32x16xf32>, vector<128x16xf32> -> vector<128x16xf32>
    %c0_10 = arith.constant 0 : index
    %c0_11 = arith.constant 0 : index
    %13 = vector.load %arg4[%c0_10, %c0_11] : memref<1x16xf32, #tpu.memory_space<vmem>>, vector<1x16xf32>
    %14 = vector.broadcast %13 : vector<1x16xf32> to vector<128x16xf32>
    %15 = arith.addf %12, %14 : vector<128x16xf32>
    %cst_12 = arith.constant 0.000000e+00 : f32
    %16 = vector.broadcast %cst_12 : f32 to vector<128x16xf32>
    %17 = arith.maximumf %15, %16 : vector<128x16xf32>
    %c0_13 = arith.constant 0 : index
    %c0_14 = arith.constant 0 : index
    %18 = vector.load %arg5[%c0_13, %c0_14] : memref<1x16xf32, #tpu.memory_space<vmem>>, vector<1x16xf32>
    %19 = vector.broadcast %18 : vector<1x16xf32> to vector<128x16xf32>
    %20 = arith.mulf %17, %19 : vector<128x16xf32>
    %cst_15 = arith.constant dense<0.000000e+00> : vector<128xf32>
    %21 = vector.multi_reduction <add>, %20, %cst_15 [1] : vector<128x16xf32> to vector<128xf32>
    %22 = vector.shape_cast %21 : vector<128xf32> to vector<128x1xf32>
    %c0_16 = arith.constant 0 : index
    %c0_17 = arith.constant 0 : index
    %23 = vector.load %arg6[%c0_16, %c0_17] : memref<1x1xf32, #tpu.memory_space<vmem>>, vector<1x1xf32>
    %24 = vector.broadcast %23 : vector<1x1xf32> to vector<128x1xf32>
    %25 = arith.addf %22, %24 : vector<128x1xf32>
    %c0_18 = arith.constant 0 : index
    %c0_19 = arith.constant 0 : index
    %26 = vector.load %arg1[%c0_18, %c0_19] : memref<1x128xi32, #tpu.memory_space<vmem>>, vector<1x128xi32>
    %c8_i32 = arith.constant 8 : i32
    %27 = vector.broadcast %c8_i32 : i32 to vector<1x128xi32>
    %28 = arith.cmpi slt, %26, %27 : vector<1x128xi32>
    %29 = vector.shape_cast %25 : vector<128x1xf32> to vector<1x128xf32>
    %cst_20 = arith.constant -1.000000e+30 : f32
    %30 = vector.broadcast %cst_20 : f32 to vector<1x128xf32>
    %31 = arith.select %28, %29, %30 : vector<1x128xi1>, vector<1x128xf32>
    %32 = tpu.iota {dimensions = array<i32: 0>} : vector<8x128xi32>
    %33 = vector.broadcast %26 : vector<1x128xi32> to vector<8x128xi32>
    %34 = arith.cmpi eq, %32, %33 : vector<8x128xi32>
    %cst_21 = arith.constant -1.000000e+30 : f32
    %35 = vector.shape_cast %31 : vector<1x128xf32> to vector<1x128xf32>
    %36 = vector.broadcast %35 : vector<1x128xf32> to vector<8x128xf32>
    %37 = vector.broadcast %cst_21 : f32 to vector<8x128xf32>
    %38 = arith.select %34, %36, %37 : vector<8x128xi1>, vector<8x128xf32>
    %cst_22 = arith.constant dense<0xFF800000> : vector<8xf32>
    %39 = vector.multi_reduction <maximumf>, %38, %cst_22 [1] : vector<8x128xf32> to vector<8xf32>
    %40 = vector.shape_cast %39 : vector<8xf32> to vector<8x1xf32>
    %c0_23 = arith.constant 0 : index
    %c0_24 = arith.constant 0 : index
    %41 = vector.load %arg10[%c0_23, %c0_24] : memref<8x1xf32, #tpu.memory_space<vmem>>, vector<8x1xf32>
    %42 = arith.maximumf %41, %40 : vector<8x1xf32>
    %43 = arith.subf %41, %42 : vector<8x1xf32>
    %44 = math.exp %43 : vector<8x1xf32>
    %cst_25 = arith.constant -1.000000e+30 : f32
    %45 = vector.shape_cast %42 : vector<8x1xf32> to vector<8x1xf32>
    %46 = vector.broadcast %45 : vector<8x1xf32> to vector<8x128xf32>
    %47 = vector.broadcast %cst_25 : f32 to vector<8x128xf32>
    %48 = arith.select %34, %46, %47 : vector<8x128xi1>, vector<8x128xf32>
    %cst_26 = arith.constant dense<0xFF800000> : vector<128xf32>
    %49 = vector.multi_reduction <maximumf>, %48, %cst_26 [0] : vector<8x128xf32> to vector<128xf32>
    %50 = vector.shape_cast %49 : vector<128xf32> to vector<1x128xf32>
    %51 = arith.subf %31, %50 : vector<1x128xf32>
    %cst_27 = arith.constant 0.000000e+00 : f32
    %52 = vector.broadcast %cst_27 : f32 to vector<1x128xf32>
    %53 = arith.minimumf %51, %52 : vector<1x128xf32>
    %54 = math.exp %53 : vector<1x128xf32>
    %cst_28 = arith.constant 0.000000e+00 : f32
    %55 = vector.shape_cast %54 : vector<1x128xf32> to vector<1x128xf32>
    %56 = vector.broadcast %55 : vector<1x128xf32> to vector<8x128xf32>
    %57 = vector.broadcast %cst_28 : f32 to vector<8x128xf32>
    %58 = arith.select %34, %56, %57 : vector<8x128xi1>, vector<8x128xf32>
    %c0_29 = arith.constant 0 : index
    %c0_30 = arith.constant 0 : index
    %59 = vector.load %arg11[%c0_29, %c0_30] : memref<8x1xf32, #tpu.memory_space<vmem>>, vector<8x1xf32>
    %60 = arith.mulf %44, %59 : vector<8x1xf32>
    %cst_31 = arith.constant dense<0.000000e+00> : vector<8xf32>
    %61 = vector.multi_reduction <add>, %58, %cst_31 [1] : vector<8x128xf32> to vector<8xf32>
    %62 = vector.shape_cast %61 : vector<8xf32> to vector<8x1xf32>
    %63 = arith.addf %60, %62 : vector<8x1xf32>
    %c0_32 = arith.constant 0 : index
    %c0_33 = arith.constant 0 : index
    %64 = vector.load %arg11[%c0_32, %c0_33] : memref<8x1xf32, #tpu.memory_space<vmem>>, vector<8x1xf32>
    tpu.vector_store %arg11[%c0_32, %c0_33], %63 {strides = array<i32>} : memref<8x1xf32, #tpu.memory_space<vmem>>, vector<8x1xf32>,
    %c0_34 = arith.constant 0 : index
    %c0_35 = arith.constant 0 : index
    %65 = vector.load %arg12[%c0_34, %c0_35] : memref<8x32xf32, #tpu.memory_space<vmem>>, vector<8x32xf32>
    %66 = vector.broadcast %44 : vector<8x1xf32> to vector<8x32xf32>
    %67 = arith.mulf %66, %65 : vector<8x32xf32>
    %cst_36 = arith.constant dense<0.000000e+00> : vector<8x32xf32>
    %68 = tpu.matmul %58, %10, %cst_36 {dimension_numbers = #tpu.dot_dimension_numbers<[1], [0], [0], [1], [0, 0, 1, 1], [], []>} : vector<8x128xf32>, vector<128x32xf32>, vector<8x32xf32> -> vector<8x32xf32>
    %69 = arith.addf %67, %68 : vector<8x32xf32>
    %c0_37 = arith.constant 0 : index
    %c0_38 = arith.constant 0 : index
    %70 = vector.load %arg12[%c0_37, %c0_38] : memref<8x32xf32, #tpu.memory_space<vmem>>, vector<8x32xf32>
    tpu.vector_store %arg12[%c0_37, %c0_38], %69 {strides = array<i32>} : memref<8x32xf32, #tpu.memory_space<vmem>>, vector<8x32xf32>,
    %c0_39 = arith.constant 0 : index
    %c0_40 = arith.constant 0 : index
    %71 = vector.load %arg10[%c0_39, %c0_40] : memref<8x1xf32, #tpu.memory_space<vmem>>, vector<8x1xf32>
    tpu.vector_store %arg10[%c0_39, %c0_40], %42 {strides = array<i32>} : memref<8x1xf32, #tpu.memory_space<vmem>>, vector<8x1xf32>,
    %c0_i32_41 = arith.constant 0 : i32
    %72 = arith.cmpi eq, %arg0, %c0_i32_41 : i32
    %73 = arith.extui %72 : i1 to i32
    %c0_i32_42 = arith.constant 0 : i32
    %74 = arith.cmpi ne, %73, %c0_i32_42 : i32
    scf.if %74 {
      %c0_43 = arith.constant 0 : index
      %c0_44 = arith.constant 0 : index
      %75 = vector.load %arg11[%c0_43, %c0_44] : memref<8x1xf32, #tpu.memory_space<vmem>>, vector<8x1xf32>
      %cst_45 = arith.constant 0.000000e+00 : f32
      %76 = vector.broadcast %cst_45 : f32 to vector<8x1xf32>
      %77 = arith.cmpf ogt, %75, %76 : vector<8x1xf32>
      %cst_46 = arith.constant 1.000000e+00 : f32
      %78 = vector.broadcast %cst_46 : f32 to vector<8x1xf32>
      %79 = arith.select %77, %75, %78 : vector<8x1xi1>, vector<8x1xf32>
      %c0_47 = arith.constant 0 : index
      %c0_48 = arith.constant 0 : index
      %80 = vector.load %arg12[%c0_47, %c0_48] : memref<8x32xf32, #tpu.memory_space<vmem>>, vector<8x32xf32>
      %81 = vector.broadcast %79 : vector<8x1xf32> to vector<8x32xf32>
      %82 = arith.divf %80, %81 : vector<8x32xf32>
      %c0_49 = arith.constant 0 : index
      %c0_50 = arith.constant 0 : index
      %83 = vector.load %arg9[%c0_49, %c0_50] : memref<8x32xf32, #tpu.memory_space<vmem>>, vector<8x32xf32>
      tpu.vector_store %arg9[%c0_49, %c0_50], %82 {strides = array<i32>} : memref<8x32xf32, #tpu.memory_space<vmem>>, vector<8x32xf32>,
    } else {
    }
    return
  }
  func.func @transform_0(%arg0: i32) -> (i32, i32) {
    %c0_i32 = arith.constant 0 : i32
    %c0_i32_0 = arith.constant 0 : i32
    return %c0_i32, %arg0 : i32, i32
  }
  func.func @transform_1(%arg0: i32) -> (i32, i32) {
    %c0_i32 = arith.constant 0 : i32
    %c0_i32_0 = arith.constant 0 : i32
    return %arg0, %c0_i32 : i32, i32
  }
  func.func @transform_2(%arg0: i32) -> (i32, i32) {
    %c0_i32 = arith.constant 0 : i32
    %c0_i32_0 = arith.constant 0 : i32
    %c0_i32_1 = arith.constant 0 : i32
    return %c0_i32, %c0_i32_0 : i32, i32
  }
  func.func @transform_3(%arg0: i32) -> (i32, i32) {
    %c0_i32 = arith.constant 0 : i32
    %c0_i32_0 = arith.constant 0 : i32
    %c0_i32_1 = arith.constant 0 : i32
    return %c0_i32, %c0_i32_0 : i32, i32
  }
  func.func @transform_4(%arg0: i32) -> (i32, i32) {
    %c0_i32 = arith.constant 0 : i32
    %c0_i32_0 = arith.constant 0 : i32
    %c0_i32_1 = arith.constant 0 : i32
    return %c0_i32, %c0_i32_0 : i32, i32
  }
  func.func @transform_5(%arg0: i32) -> (i32, i32) {
    %c0_i32 = arith.constant 0 : i32
    %c0_i32_0 = arith.constant 0 : i32
    %c0_i32_1 = arith.constant 0 : i32
    return %c0_i32, %c0_i32_0 : i32, i32
  }
  func.func @transform_6(%arg0: i32) -> (i32, i32) {
    %c0_i32 = arith.constant 0 : i32
    %c0_i32_0 = arith.constant 0 : i32
    %c0_i32_1 = arith.constant 0 : i32
    return %c0_i32, %c0_i32_0 : i32, i32
  }
  func.func @transform_7(%arg0: i32) -> (i32, i32) {
    %c0_i32 = arith.constant 0 : i32
    %c0_i32_0 = arith.constant 0 : i32
    %c0_i32_1 = arith.constant 0 : i32
    return %c0_i32, %c0_i32_0 : i32, i32
  }
  func.func @transform_8(%arg0: i32) -> (i32, i32) {
    %c0_i32 = arith.constant 0 : i32
    %c0_i32_0 = arith.constant 0 : i32
    %c0_i32_1 = arith.constant 0 : i32
    return %c0_i32, %c0_i32_0 : i32, i32
  }
}

</mosaic_0001>

<bundles_post_ra>
// kernel: tpu_custom_call.1
= control target key start
LH: loop header
LB: loop body
LE: loop exit
PB: predicated region body
PF: predicated region fallthrough
CT: control target
= control target key end

     0   :  { %s1337_s0 = inlined_call_operand.vmem [shape: s32[1,128], index: 0, kind: input, shape index: {}]   ;;  %s1338_s1 = inlined_call_operand.vmem [shape: f32[128,32], index: 1, kind: input, shape index: {}]   ;;  %s1339_s2 = inlined_call_operand.vmem [shape: f32[32,16], index: 2, kind: input, shape index: {}]   ;;  %s1340_s3 = inlined_call_operand.vmem [shape: f32[1,16], index: 3, kind: input, shape index: {}]   ;;  %s1341_s4 = inlined_call_operand.vmem [shape: f32[1,16], index: 4, kind: input, shape index: {}]   ;;  %s1342_s5 = inlined_call_operand.<no memory space> [shape: f32[1,1], index: 5, kind: input, shape index: {}]   ;;  %s1343_s6 = inlined_call_operand.vmem [shape: f32[32,32], index: 6, kind: input, shape index: {}]   ;;  %s1344_s7 = inlined_call_operand.vmem [shape: f32[1,32], index: 7, kind: input, shape index: {}]   ;;  %s1345_s8 = inlined_call_operand.hbm [shape: f32[8,32], index: 8, kind: output, shape index: {}]  }
   0x1   :  { %v13_v0 = vstv %s1342_s5 }
   0x2   :  { %14 = vst [vmem:[#allocation5] sm:$0x1] %v13_v0 }
   0x3   :  { %v198_v1 = vld [vmem:[%s1339_s2 + $0x18] sm:$0xff]  ;;  %v197_v2 = vld [vmem:[%s1339_s2 + $0x10] sm:$0xff]  ;;  %v196_v3 = vld [vmem:[%s1339_s2 + $0x8] sm:$0xff] }
   0x4   :  { %215 = vmatpush.msra.mxu1 %v198_v1  ;;  %920 = vmatpush.msra.mxu2 %v198_v1  ;;  %v195_v4 = vld [vmem:[%s1339_s2] sm:$0xff] }
   0x6   :  { %216 = vmatpush.msra.mxu1 %v197_v2  ;;  %921 = vmatpush.msra.mxu2 %v197_v2 }
   0x7   :  { %15 = vsyncpa [#allocation7], 0  ;;  %vm39_vm0 = vcmask 261120   ;;  %v1047_v5 = vld [vmem:[%s1338_s1] sm:$0xff]  ;;  %v1054_v6 = vld [vmem:[%s1338_s1 + $0x8] sm:$0xff]  ;;  %vm304_vm1 = vcmask 130048  }
   0x8   :  { %217 = vmatpush.msra.mxu1 %v196_v3  ;;  %922 = vmatpush.msra.mxu2 %v196_v3  ;;  %v43_v7 = vld [vmem:[%s1338_s1 + $0x10] sm:$0xff]  ;;  %v44_v8 = vld [vmem:[%s1338_s1 + $0x18] sm:$0xff]  ;;  %v1069_v9 = vld [vmem:[%s1338_s1 + $0x48] sm:$0xff]  ;;  %vm707_vm2 = vcmask 130112   ;;  %vm711_vm3 = vcmask 195712   ;;  %vm715_vm4 = vcmask 261312  }
   0x9   :  { %v45_v10 = vld [vmem:[%s1338_s1 + $0x20] sm:$0xff]  ;;  %v1080_v11 = vld [vmem:[%s1338_s1 + $0x50] sm:$0xff]  ;;  %v46_v12 = vld [vmem:[%s1338_s1 + $0x28] sm:$0xff]  ;;  %vm719_vm5 = vcmask 326912   ;;  %vm723_vm6 = vcmask 392512   ;;  %vm727_vm7 = vcmask 458112  }
   0xa   :  { %218 = vmatpush.msra.mxu1 %v195_v4  ;;  %923 = vmatpush.msra.mxu2 %v195_v4  ;;  %v52_v13 = vld [vmem:[%s1338_s1 + $0x58] sm:$0xff]  ;;  %v47_v14 = vld [vmem:[%s1338_s1 + $0x30] sm:$0xff]  ;;  %v53_v15 = vld [vmem:[%s1338_s1 + $0x60] sm:$0xff]  ;;  %vm731_vm8 = vcmask 523712   ;;  %vm735_vm9 = vcmask 589312   ;;  %vm739_vm10 = vcmask 654912  }
   0xb   :  { %899 = vmatmul.msk.f32.vlgmr.msra.gmra.mxu1 %vm39_vm0, %v1047_v5  ;;  %908 = vmatmul.msk.f32.vlgmr.msra.gmra.mxu2 %vm39_vm0, %v1069_v9  ;;  %v48_v16 = vld [vmem:[%s1338_s1 + $0x38] sm:$0xff]  ;;  %v54_v17 = vld [vmem:[%s1338_s1 + $0x68] sm:$0xff]  ;;  %v49_v18 = vld [vmem:[%s1338_s1 + $0x40] sm:$0xff]  ;;  %vm743_vm11 = vcmask 720512   ;;  %vm747_vm12 = vcmask 786112   ;;  %vm751_vm13 = vcmask 851712  }
   0xc   :  { %v55_v19 = vld [vmem:[%s1338_s1 + $0x70] sm:$0xff]  ;;  %v56_v20 = vld [vmem:[%s1338_s1 + $0x78] sm:$0xff]  ;;  %v1123_v21 = vld [vmem:[%s1340_s3] ss:$0 sm:$0xff]  ;;  %vm755_vm14 = vcmask 917312   ;;  %vm759_vm15 = vcmask 982912  }
   0xd   :  { %v1129_v24 = vld [vmem:[%s1341_s4] ss:$0 sm:$0xff]  ;;  %s874_s12 = sshll.u32 %s1345_s8, 4  ;;  %s875_s12 = int_to_ptr.hbm [resolvable:$true] %s874_s12 }
  0x13   :  { %900 = vmatmul.msk.f32.gmra.mxu1 %vm39_vm0, %v1054_v6  ;;  %909 = vmatmul.msk.f32.gmra.mxu2 %vm39_vm0, %v1080_v11 }
  0x1b   :  { %901 = vmatmul.msk.f32.gmra.mxu1 %vm39_vm0, %v43_v7  ;;  %910 = vmatmul.msk.f32.gmra.mxu2 %vm39_vm0, %v52_v13 }
  0x23   :  { %902 = vmatmul.msk.f32.gmra.mxu1 %vm39_vm0, %v44_v8  ;;  %911 = vmatmul.msk.f32.gmra.mxu2 %vm39_vm0, %v53_v15 }
  0x2b   :  { %903 = vmatmul.msk.f32.gmra.mxu1 %vm39_vm0, %v45_v10  ;;  %912 = vmatmul.msk.f32.gmra.mxu2 %vm39_vm0, %v54_v17 }
  0x33   :  { %904 = vmatmul.msk.f32.gmra.mxu1 %vm39_vm0, %v46_v12  ;;  %913 = vmatmul.msk.f32.gmra.mxu2 %vm39_vm0, %v55_v19 }
  0x3b   :  { %905 = vmatmul.msk.f32.gmra.mxu1 %vm39_vm0, %v47_v14  ;;  %914 = vmatmul.msk.f32.gmra.mxu2 %vm39_vm0, %v56_v20 }
  0x43   :  { %906 = vmatmul.msk.f32.gmra.mxu1 %vm39_vm0, %v48_v16 }
  0x4b   :  { %907 = vmatmul.msk.f32.gmra.mxu1 %vm39_vm0, %v49_v18 }
  0x88   :  { %v220_v22 = vpop.f32.mrf.mxu1 }
  0x89   :  { %v221_v23 = vadd.f32 %v1123_v21, %v220_v22 }
  0x8b   :  { %v268_v25 = vmax.f32 %v221_v23, 0.0 }
  0x8d   :  { %v288_v26 = vmul.f32 %v1129_v24, %v268_v25 }
  0x8e   :  { %v247_v43 = vpop.f32.mrf.mxu2 }
  0x8f   :  { %v305_v27 = vsel %vm304_vm1, %v288_v26, 0.0  ;;  %v248_v58 = vadd.f32 %v1123_v21, %v247_v43 }
  0x90   :  { %v223_v28 = vpop.f32.mrf.mxu1  ;;  %306 = vadd.xlane.f32.xlu0 %v305_v27 }
  0x91   :  { %v224_v29 = vadd.f32 %v1123_v21, %v223_v28  ;;  %v277_v61 = vmax.f32 %v248_v58, 0.0 }
  0x93   :  { %v269_v30 = vmax.f32 %v224_v29, 0.0  ;;  %v297_v3 = vmul.f32 %v1129_v24, %v277_v61 }
  0x95   :  { %v289_v31 = vmul.f32 %v1129_v24, %v269_v30  ;;  %v332_v12 = vsel %vm304_vm1, %v297_v3, 0.0 }
  0x96   :  { %v250_v49 = vpop.f32.mrf.mxu2 }
  0x97   :  { %v308_v32 = vsel %vm304_vm1, %v289_v31, 0.0  ;;  %v251_v2 = vadd.f32 %v1123_v21, %v250_v49 }
  0x98   :  { %v226_v33 = vpop.f32.mrf.mxu1  ;;  %309 = vadd.xlane.f32.xlu0 %v308_v32 }
  0x99   :  { %v227_v34 = vadd.f32 %v1123_v21, %v226_v33  ;;  %v278_v10 = vmax.f32 %v251_v2, 0.0 }
  0x9b   :  { %v270_v35 = vmax.f32 %v227_v34, 0.0  ;;  %v298_v19 = vmul.f32 %v1129_v24, %v278_v10 }
  0x9d   :  { %v290_v36 = vmul.f32 %v1129_v24, %v270_v35  ;;  %v335_v27 = vsel %vm304_vm1, %v298_v19, 0.0 }
  0x9e   :  { %v253_v55 = vpop.f32.mrf.mxu2 }
  0x9f   :  { %v311_v37 = vsel %vm304_vm1, %v290_v36, 0.0  ;;  %v254_v18 = vadd.f32 %v1123_v21, %v253_v55 }
  0xa0   :  { %v229_v38 = vpop.f32.mrf.mxu1  ;;  %312 = vadd.xlane.f32.xlu1 %v311_v37 }
  0xa1   :  { %v230_v39 = vadd.f32 %v1123_v21, %v229_v38  ;;  %v279_v26 = vmax.f32 %v254_v18, 0.0 }
  0xa3   :  { %v271_v40 = vmax.f32 %v230_v39, 0.0  ;;  %v299_v32 = vmul.f32 %v1129_v24, %v279_v26 }
  0xa5   :  { %v291_v41 = vmul.f32 %v1129_v24, %v271_v40  ;;  %v338_v35 = vsel %vm304_vm1, %v299_v32, 0.0 }
  0xa6   :  { %v256_v63 = vpop.f32.mrf.mxu2 }
  0xa7   :  { %v314_v42 = vsel %vm304_vm1, %v291_v41, 0.0  ;;  %v257_v4 = vadd.f32 %v1123_v21, %v256_v63 }
  0xa8   :  { %v232_v44 = vpop.f32.mrf.mxu1  ;;  %315 = vadd.xlane.f32.xlu1 %v314_v42 }
  0xa9   :  { %v233_v45 = vadd.f32 %v1123_v21, %v232_v44  ;;  %v280_v13 = vmax.f32 %v257_v4, 0.0 }
  0xab   :  { %v272_v46 = vmax.f32 %v233_v45, 0.0  ;;  %v300_v22 = vmul.f32 %v1129_v24, %v280_v13  ;;  %v980_v45 = vmov 0  }
  0xac   :  { %928 = vset.pattern.permute.xlu1 %v980_v45  ;;  %929 = vset.pattern.permute.xlu2 %v980_v45 }
  0xad   :  { %v292_v47 = vmul.f32 %v1129_v24, %v272_v46  ;;  %v341_v29 = vsel %vm304_vm1, %v300_v22, 0.0  ;;  %930 = vset.pattern.permute.xlu0 %v980_v45  ;;  %v1178_v46 = vld [vmem:[#allocation5] ss:$0 sm:$0xff] }
  0xae   :  { %v259_v15 = vpop.f32.mrf.mxu2 }
  0xaf   :  { %v317_v48 = vsel %vm304_vm1, %v292_v47, 0.0  ;;  %v260_v20 = vadd.f32 %v1123_v21, %v259_v15 }
  0xb0   :  { %v235_v50 = vpop.f32.mrf.mxu1  ;;  %318 = vadd.xlane.f32.xlu2 %v317_v48 }
  0xb1   :  { %v236_v51 = vadd.f32 %v1123_v21, %v235_v50  ;;  %v281_v28 = vmax.f32 %v260_v20, 0.0 }
  0xb3   :  { %v273_v52 = vmax.f32 %v236_v51, 0.0  ;;  %v301_v34 = vmul.f32 %v1129_v24, %v281_v28 }
  0xb5   :  { %v293_v53 = vmul.f32 %v1129_v24, %v273_v52  ;;  %v344_v37 = vsel %vm304_vm1, %v301_v34, 0.0 }
  0xb6   :  { %v262_v31 = vpop.f32.mrf.mxu2 }
  0xb7   :  { %v320_v54 = vsel %vm304_vm1, %v293_v53, 0.0  ;;  %v263_v33 = vadd.f32 %v1123_v21, %v262_v31 }
  0xb8   :  { %v238_v56 = vpop.f32.mrf.mxu1  ;;  %321 = vadd.xlane.f32.xlu2 %v320_v54 }
  0xb9   :  { %v239_v57 = vadd.f32 %v1123_v21, %v238_v56  ;;  %v282_v36 = vmax.f32 %v263_v33, 0.0 }
  0xbb   :  { %v274_v59 = vmax.f32 %v239_v57, 0.0  ;;  %v302_v38 = vmul.f32 %v1129_v24, %v282_v36 }
  0xbd   :  { %v294_v60 = vmul.f32 %v1129_v24, %v274_v59  ;;  %v347_v39 = vsel %vm304_vm1, %v302_v38, 0.0 }
  0xbe   :  { %v265_v40 = vpop.f32.mrf.mxu2 }
  0xbf   :  { %v323_v62 = vsel %vm304_vm1, %v294_v60, 0.0  ;;  %v266_v41 = vadd.f32 %v1123_v21, %v265_v40 }
  0xc0   :  { %v241_v0 = vpop.f32.mrf.mxu1  ;;  %324 = vadd.xlane.f32.xlu0 %v323_v62 }
  0xc1   :  { %v242_v1 = vadd.f32 %v1123_v21, %v241_v0  ;;  %v283_v42 = vmax.f32 %v266_v41, 0.0 }
  0xc3   :  { %v275_v7 = vmax.f32 %v242_v1, 0.0  ;;  %v303_v43 = vmul.f32 %v1129_v24, %v283_v42 }
  0xc5   :  { %v295_v8 = vmul.f32 %v1129_v24, %v275_v7  ;;  %v350_v44 = vsel %vm304_vm1, %v303_v43, 0.0 }
  0xc7   :  { %v326_v14 = vsel %vm304_vm1, %v295_v8, 0.0 }
  0xc8   :  { %v244_v16 = vpop.f32.mrf.mxu1  ;;  %327 = vadd.xlane.f32.xlu1 %v326_v14  ;;  %333 = vadd.xlane.f32.xlu0 %v332_v12 }
  0xc9   :  { %v245_v17 = vadd.f32 %v1123_v21, %v244_v16 }
  0xcb   :  { %v276_v23 = vmax.f32 %v245_v17, 0.0 }
  0xcd   :  { %v296_v25 = vmul.f32 %v1129_v24, %v276_v23 }
  0xcf   :  { %v329_v30 = vsel %vm304_vm1, %v296_v25, 0.0  ;;  %vm763_vm1 = vcmask 1048512  }
  0xd0   :  { %330 = vadd.xlane.f32.xlu2 %v329_v30  ;;  %336 = vadd.xlane.f32.xlu1 %v335_v27 }
  0xd1   :  { %342 = vadd.xlane.f32.xlu0 %v341_v29 }
  0xd8   :  { %339 = vadd.xlane.f32.xlu2 %v338_v35  ;;  %345 = vadd.xlane.f32.xlu1 %v344_v37 }
  0xd9   :  { %351 = vadd.xlane.f32.xlu0 %v350_v44 }
  0xe0   :  { %348 = vadd.xlane.f32.xlu2 %v347_v39 }
 0x103   :  { %v307_v47 = vpop.xlane.xlu0 %306 }
 0x104   :  { %v357_v48 = vadd.f32 %v1178_v46, %v307_v47 }
 0x106   :  { %v391_v49 = vrot.slane %v357_v48, 1  ;;  %v392_v50 = vrot.slane %v357_v48, 2  ;;  %v393_v51 = vrot.slane %v357_v48, 3  ;;  %503 = vst [vmem:[#allocation1] ss:$9 sm:$0xff] %v357_v48  ;;  %v394_v21 = vrot.slane %v357_v48, 4 }
 0x107   :  { %v395_v52 = vrot.slane %v357_v48, 5  ;;  %v396_v24 = vrot.slane %v357_v48, 6  ;;  %v397_v53 = vrot.slane %v357_v48, 7 }
 0x108   :  { %505 = vst [vmem:[#allocation1 + $0x1] ss:$9 sm:$0xff] %v391_v49 }
 0x109   :  { %507 = vst [vmem:[#allocation1 + $0x2] ss:$9 sm:$0xff] %v392_v50 }
 0x10a   :  { %509 = vst [vmem:[#allocation1 + $0x3] ss:$9 sm:$0xff] %v393_v51 }
 0x10b   :  { %511 = vst [vmem:[#allocation1 + $0x4] ss:$9 sm:$0xff] %v394_v21  ;;  %v310_v54 = vpop.xlane.xlu0 %309 }
 0x10c   :  { %513 = vst [vmem:[#allocation1 + $0x5] ss:$9 sm:$0xff] %v395_v52  ;;  %v358_v55 = vadd.f32 %v1178_v46, %v310_v54 }
 0x10d   :  { %515 = vst [vmem:[#allocation1 + $0x6] ss:$9 sm:$0xff] %v396_v24 }
 0x10e   :  { %517 = vst [vmem:[#allocation1 + $0x7] ss:$9 sm:$0xff] %v397_v53  ;;  %v398_v56 = vrot.slane %v358_v55, 1  ;;  %v399_v57 = vrot.slane %v358_v55, 2  ;;  %v400_v59 = vrot.slane %v358_v55, 3  ;;  %v401_v60 = vrot.slane %v358_v55, 4 }
 0x10f   :  { %v402_v61 = vrot.slane %v358_v55, 5  ;;  %v403_v62 = vrot.slane %v358_v55, 6  ;;  %v404_v63 = vrot.slane %v358_v55, 7 }
 0x113   :  { %v313_v0 = vpop.xlane.xlu1 %312 }
 0x114   :  { %v359_v1 = vadd.f32 %v1178_v46, %v313_v0 }
 0x115   :  { %v518_v58 = vld [vmem:[#allocation1] sm:$0xff] }
 0x116   :  { %519 = vst [vmem:[#allocation1] ss:$9 sm:$0xff] %v358_v55  ;;  %655 = vperm.xlu1 %928, %v518_v58   ;;  %v405_v2 = vrot.slane %v359_v1, 1  ;;  %v406_v3 = vrot.slane %v359_v1, 2  ;;  %v407_v7 = vrot.slane %v359_v1, 3  ;;  %v408_v8 = vrot.slane %v359_v1, 4 }
 0x117   :  { %520 = vst [vmem:[#allocation1 + $0x1] ss:$9 sm:$0xff] %v398_v56  ;;  %v409_v10 = vrot.slane %v359_v1, 5  ;;  %v410_v12 = vrot.slane %v359_v1, 6  ;;  %v411_v13 = vrot.slane %v359_v1, 7 }
 0x118   :  { %521 = vst [vmem:[#allocation1 + $0x2] ss:$9 sm:$0xff] %v399_v57 }
 0x119   :  { %522 = vst [vmem:[#allocation1 + $0x3] ss:$9 sm:$0xff] %v400_v59 }
 0x11a   :  { %523 = vst [vmem:[#allocation1 + $0x4] ss:$9 sm:$0xff] %v401_v60 }
 0x11b   :  { %524 = vst [vmem:[#allocation1 + $0x5] ss:$9 sm:$0xff] %v402_v61  ;;  %v316_v14 = vpop.xlane.xlu1 %315 }
 0x11c   :  { %525 = vst [vmem:[#allocation1 + $0x6] ss:$9 sm:$0xff] %v403_v62  ;;  %v360_v15 = vadd.f32 %v1178_v46, %v316_v14 }
 0x11d   :  { %526 = vst [vmem:[#allocation1 + $0x7] ss:$9 sm:$0xff] %v404_v63 }
 0x11e   :  { %v412_v16 = vrot.slane %v360_v15, 1  ;;  %v413_v17 = vrot.slane %v360_v15, 2  ;;  %v414_v19 = vrot.slane %v360_v15, 3  ;;  %v415_v20 = vrot.slane %v360_v15, 4 }
 0x11f   :  { %v416_v22 = vrot.slane %v360_v15, 5  ;;  %v417_v23 = vrot.slane %v360_v15, 6  ;;  %v418_v25 = vrot.slane %v360_v15, 7 }
 0x123   :  { %v319_v26 = vpop.xlane.xlu2 %318 }
 0x124   :  { %v527_v4 = vld [vmem:[#allocation1] sm:$0xff]  ;;  %v361_v27 = vadd.f32 %v1178_v46, %v319_v26 }
 0x125   :  { %528 = vst [vmem:[#allocation1] ss:$9 sm:$0xff] %v359_v1  ;;  %658 = vperm.xlu2 %929, %v527_v4  }
 0x126   :  { %529 = vst [vmem:[#allocation1 + $0x1] ss:$9 sm:$0xff] %v405_v2  ;;  %v419_v28 = vrot.slane %v361_v27, 1  ;;  %v420_v29 = vrot.slane %v361_v27, 2  ;;  %v421_v31 = vrot.slane %v361_v27, 3  ;;  %v422_v32 = vrot.slane %v361_v27, 4 }
 0x127   :  { %530 = vst [vmem:[#allocation1 + $0x2] ss:$9 sm:$0xff] %v406_v3  ;;  %v423_v33 = vrot.slane %v361_v27, 5  ;;  %v424_v34 = vrot.slane %v361_v27, 6  ;;  %v425_v35 = vrot.slane %v361_v27, 7 }
 0x128   :  { %531 = vst [vmem:[#allocation1 + $0x3] ss:$9 sm:$0xff] %v407_v7 }
 0x129   :  { %532 = vst [vmem:[#allocation1 + $0x4] ss:$9 sm:$0xff] %v408_v8 }
 0x12a   :  { %533 = vst [vmem:[#allocation1 + $0x5] ss:$9 sm:$0xff] %v409_v10 }
 0x12b   :  { %534 = vst [vmem:[#allocation1 + $0x6] ss:$9 sm:$0xff] %v410_v12  ;;  %v322_v36 = vpop.xlane.xlu2 %321 }
 0x12c   :  { %535 = vst [vmem:[#allocation1 + $0x7] ss:$9 sm:$0xff] %v411_v13  ;;  %v362_v37 = vadd.f32 %v1178_v46, %v322_v36 }
 0x12e   :  { %v426_v38 = vrot.slane %v362_v37, 1  ;;  %v427_v39 = vrot.slane %v362_v37, 2  ;;  %v428_v41 = vrot.slane %v362_v37, 3  ;;  %v429_v42 = vrot.slane %v362_v37, 4 }
 0x12f   :  { %v430_v43 = vrot.slane %v362_v37, 5  ;;  %v431_v44 = vrot.slane %v362_v37, 6  ;;  %v432_v45 = vrot.slane %v362_v37, 7 }
 0x133   :  { %v536_v18 = vld [vmem:[#allocation1] sm:$0xff]  ;;  %v325_v47 = vpop.xlane.xlu0 %324 }
 0x134   :  { %537 = vst [vmem:[#allocation1] ss:$9 sm:$0xff] %v360_v15  ;;  %661 = vperm.xlu0 %930, %v536_v18   ;;  %v363_v48 = vadd.f32 %v1178_v46, %v325_v47 }
 0x135   :  { %538 = vst [vmem:[#allocation1 + $0x1] ss:$9 sm:$0xff] %v412_v16 }
 0x136   :  { %539 = vst [vmem:[#allocation1 + $0x2] ss:$9 sm:$0xff] %v413_v17  ;;  %v433_v49 = vrot.slane %v363_v48, 1  ;;  %v434_v50 = vrot.slane %v363_v48, 2  ;;  %v435_v21 = vrot.slane %v363_v48, 3  ;;  %v436_v52 = vrot.slane %v363_v48, 4 }
 0x137   :  { %540 = vst [vmem:[#allocation1 + $0x3] ss:$9 sm:$0xff] %v414_v19  ;;  %v437_v24 = vrot.slane %v363_v48, 5  ;;  %v438_v53 = vrot.slane %v363_v48, 6  ;;  %v439_v54 = vrot.slane %v363_v48, 7 }
 0x138   :  { %541 = vst [vmem:[#allocation1 + $0x4] ss:$9 sm:$0xff] %v415_v20 }
 0x139   :  { %542 = vst [vmem:[#allocation1 + $0x5] ss:$9 sm:$0xff] %v416_v22 }
 0x13a   :  { %543 = vst [vmem:[#allocation1 + $0x6] ss:$9 sm:$0xff] %v417_v23 }
 0x13b   :  { %544 = vst [vmem:[#allocation1 + $0x7] ss:$9 sm:$0xff] %v418_v25  ;;  %v328_v55 = vpop.xlane.xlu1 %327  ;;  %v334_v15 = vpop.xlane.xlu0 %333 }
 0x13c   :  { %v364_v56 = vadd.f32 %v1178_v46, %v328_v55  ;;  %v366_v16 = vadd.f32 %v1178_v46, %v334_v15 }
 0x13e   :  { %v440_v57 = vrot.slane %v364_v56, 1  ;;  %v441_v58 = vrot.slane %v364_v56, 2  ;;  %v442_v60 = vrot.slane %v364_v56, 3  ;;  %v443_v61 = vrot.slane %v364_v56, 4 }
 0x13f   :  { %v444_v62 = vrot.slane %v364_v56, 5  ;;  %v445_v63 = vrot.slane %v364_v56, 6  ;;  %v446_v0 = vrot.slane %v364_v56, 7  ;;  %v454_v17 = vrot.slane %v366_v16, 1 }
 0x140   :  { %v455_v18 = vrot.slane %v366_v16, 2  ;;  %v456_v20 = vrot.slane %v366_v16, 3  ;;  %v457_v22 = vrot.slane %v366_v16, 4  ;;  %v458_v23 = vrot.slane %v366_v16, 5 }
 0x141   :  { %v459_v25 = vrot.slane %v366_v16, 6  ;;  %v460_v26 = vrot.slane %v366_v16, 7 }
 0x142   :  { %v545_v30 = vld [vmem:[#allocation1] sm:$0xff] }
 0x143   :  { %546 = vst [vmem:[#allocation1] ss:$9 sm:$0xff] %v361_v27  ;;  %664 = vperm.xlu2 %929, %v545_v30   ;;  %v331_v1 = vpop.xlane.xlu2 %330  ;;  %v337_v27 = vpop.xlane.xlu1 %336 }
 0x144   :  { %547 = vst [vmem:[#allocation1 + $0x1] ss:$9 sm:$0xff] %v419_v28  ;;  %v365_v2 = vadd.f32 %v1178_v46, %v331_v1  ;;  %v367_v28 = vadd.f32 %v1178_v46, %v337_v27 }
 0x145   :  { %548 = vst [vmem:[#allocation1 + $0x2] ss:$9 sm:$0xff] %v420_v29 }
 0x146   :  { %549 = vst [vmem:[#allocation1 + $0x3] ss:$9 sm:$0xff] %v421_v31  ;;  %v447_v3 = vrot.slane %v365_v2, 1  ;;  %v448_v4 = vrot.slane %v365_v2, 2  ;;  %v449_v8 = vrot.slane %v365_v2, 3  ;;  %v450_v10 = vrot.slane %v365_v2, 4 }
 0x147   :  { %550 = vst [vmem:[#allocation1 + $0x4] ss:$9 sm:$0xff] %v422_v32  ;;  %v451_v12 = vrot.slane %v365_v2, 5  ;;  %v452_v13 = vrot.slane %v365_v2, 6  ;;  %v453_v14 = vrot.slane %v365_v2, 7  ;;  %v461_v29 = vrot.slane %v367_v28, 1 }
 0x148   :  { %551 = vst [vmem:[#allocation1 + $0x5] ss:$9 sm:$0xff] %v423_v33  ;;  %v462_v30 = vrot.slane %v367_v28, 2  ;;  %v463_v32 = vrot.slane %v367_v28, 3  ;;  %v464_v33 = vrot.slane %v367_v28, 4  ;;  %v467_v36 = vrot.slane %v367_v28, 7 }
 0x149   :  { %552 = vst [vmem:[#allocation1 + $0x6] ss:$9 sm:$0xff] %v424_v34  ;;  %v465_v34 = vrot.slane %v367_v28, 5 }
 0x14a   :  { %553 = vst [vmem:[#allocation1 + $0x7] ss:$9 sm:$0xff] %v425_v35  ;;  %v466_v35 = vrot.slane %v367_v28, 6 }
 0x151   :  { %v554_v40 = vld [vmem:[#allocation1] sm:$0xff] }
 0x152   :  { %555 = vst [vmem:[#allocation1] ss:$9 sm:$0xff] %v362_v37  ;;  %667 = vperm.xlu1 %928, %v554_v40   ;;  %v340_v37 = vpop.xlane.xlu2 %339 }
 0x153   :  { %556 = vst [vmem:[#allocation1 + $0x1] ss:$9 sm:$0xff] %v426_v38  ;;  %v368_v38 = vadd.f32 %v1178_v46, %v340_v37 }
 0x154   :  { %557 = vst [vmem:[#allocation1 + $0x2] ss:$9 sm:$0xff] %v427_v39 }
 0x155   :  { %558 = vst [vmem:[#allocation1 + $0x3] ss:$9 sm:$0xff] %v428_v41  ;;  %v468_v39 = vrot.slane %v368_v38, 1  ;;  %v469_v40 = vrot.slane %v368_v38, 2  ;;  %v474_v47 = vrot.slane %v368_v38, 7 }
 0x156   :  { %559 = vst [vmem:[#allocation1 + $0x4] ss:$9 sm:$0xff] %v429_v42  ;;  %v470_v42 = vrot.slane %v368_v38, 3 }
 0x157   :  { %560 = vst [vmem:[#allocation1 + $0x5] ss:$9 sm:$0xff] %v430_v43  ;;  %v471_v43 = vrot.slane %v368_v38, 4 }
 0x158   :  { %561 = vst [vmem:[#allocation1 + $0x6] ss:$9 sm:$0xff] %v431_v44  ;;  %v472_v44 = vrot.slane %v368_v38, 5 }
 0x159   :  { %562 = vst [vmem:[#allocation1 + $0x7] ss:$9 sm:$0xff] %v432_v45  ;;  %v473_v45 = vrot.slane %v368_v38, 6 }
 0x160   :  { %v563_v51 = vld [vmem:[#allocation1] sm:$0xff] }
 0x161   :  { %564 = vst [vmem:[#allocation1] ss:$9 sm:$0xff] %v363_v48  ;;  %670 = vperm.xlu2 %929, %v563_v51   ;;  %v343_v48 = vpop.xlane.xlu0 %342 }
 0x162   :  { %565 = vst [vmem:[#allocation1 + $0x1] ss:$9 sm:$0xff] %v433_v49  ;;  %v369_v49 = vadd.f32 %v1178_v46, %v343_v48 }
 0x163   :  { %566 = vst [vmem:[#allocation1 + $0x2] ss:$9 sm:$0xff] %v434_v50 }
 0x164   :  { %567 = vst [vmem:[#allocation1 + $0x3] ss:$9 sm:$0xff] %v435_v21  ;;  %v475_v50 = vrot.slane %v369_v49, 1  ;;  %v476_v51 = vrot.slane %v369_v49, 2  ;;  %v481_v55 = vrot.slane %v369_v49, 7 }
 0x165   :  { %568 = vst [vmem:[#allocation1 + $0x4] ss:$9 sm:$0xff] %v436_v52  ;;  %v477_v52 = vrot.slane %v369_v49, 3 }
 0x166   :  { %569 = vst [vmem:[#allocation1 + $0x5] ss:$9 sm:$0xff] %v437_v24  ;;  %v478_v24 = vrot.slane %v369_v49, 4 }
 0x167   :  { %570 = vst [vmem:[#allocation1 + $0x6] ss:$9 sm:$0xff] %v438_v53  ;;  %v479_v53 = vrot.slane %v369_v49, 5 }
 0x168   :  { %571 = vst [vmem:[#allocation1 + $0x7] ss:$9 sm:$0xff] %v439_v54  ;;  %v480_v54 = vrot.slane %v369_v49, 6 }
 0x16f   :  { %v572_v59 = vld [vmem:[#allocation1] sm:$0xff] }
 0x170   :  { %573 = vst [vmem:[#allocation1] ss:$9 sm:$0xff] %v364_v56  ;;  %673 = vperm.xlu1 %928, %v572_v59   ;;  %v346_v56 = vpop.xlane.xlu1 %345 }
 0x171   :  { %574 = vst [vmem:[#allocation1 + $0x1] ss:$9 sm:$0xff] %v440_v57  ;;  %v370_v57 = vadd.f32 %v1178_v46, %v346_v56 }
 0x172   :  { %575 = vst [vmem:[#allocation1 + $0x2] ss:$9 sm:$0xff] %v441_v58 }
 0x173   :  { %576 = vst [vmem:[#allocation1 + $0x3] ss:$9 sm:$0xff] %v442_v60  ;;  %v482_v58 = vrot.slane %v370_v57, 1  ;;  %v483_v59 = vrot.slane %v370_v57, 2  ;;  %v488_v1 = vrot.slane %v370_v57, 7 }
 0x174   :  { %577 = vst [vmem:[#allocation1 + $0x4] ss:$9 sm:$0xff] %v443_v61  ;;  %v484_v61 = vrot.slane %v370_v57, 3 }
 0x175   :  { %578 = vst [vmem:[#allocation1 + $0x5] ss:$9 sm:$0xff] %v444_v62  ;;  %v485_v62 = vrot.slane %v370_v57, 4 }
 0x176   :  { %579 = vst [vmem:[#allocation1 + $0x6] ss:$9 sm:$0xff] %v445_v63  ;;  %v486_v63 = vrot.slane %v370_v57, 5 }
 0x177   :  { %580 = vst [vmem:[#allocation1 + $0x7] ss:$9 sm:$0xff] %v446_v0  ;;  %v487_v0 = vrot.slane %v370_v57, 6 }
 0x17e   :  { %v581_v7 = vld [vmem:[#allocation1] sm:$0xff] }
 0x17f   :  { %582 = vst [vmem:[#allocation1] ss:$9 sm:$0xff] %v365_v2  ;;  %676 = vperm.xlu2 %929, %v581_v7   ;;  %v349_v2 = vpop.xlane.xlu2 %348 }
 0x180   :  { %583 = vst [vmem:[#allocation1 + $0x1] ss:$9 sm:$0xff] %v447_v3  ;;  %v371_v3 = vadd.f32 %v1178_v46, %v349_v2 }
 0x181   :  { %584 = vst [vmem:[#allocation1 + $0x2] ss:$9 sm:$0xff] %v448_v4 }
 0x182   :  { %585 = vst [vmem:[#allocation1 + $0x3] ss:$9 sm:$0xff] %v449_v8  ;;  %v489_v4 = vrot.slane %v371_v3, 1  ;;  %v490_v7 = vrot.slane %v371_v3, 2  ;;  %v491_v8 = vrot.slane %v371_v3, 3  ;;  %v495_v15 = vrot.slane %v371_v3, 7 }
 0x183   :  { %586 = vst [vmem:[#allocation1 + $0x4] ss:$9 sm:$0xff] %v450_v10 }
 0x184   :  { %587 = vst [vmem:[#allocation1 + $0x5] ss:$9 sm:$0xff] %v451_v12  ;;  %v492_v12 = vrot.slane %v371_v3, 4 }
 0x185   :  { %588 = vst [vmem:[#allocation1 + $0x6] ss:$9 sm:$0xff] %v452_v13  ;;  %v493_v13 = vrot.slane %v371_v3, 5 }
 0x186   :  { %589 = vst [vmem:[#allocation1 + $0x7] ss:$9 sm:$0xff] %v453_v14  ;;  %v494_v14 = vrot.slane %v371_v3, 6 }
 0x18d   :  { %v590_v19 = vld [vmem:[#allocation1] sm:$0xff] }
 0x18e   :  { %591 = vst [vmem:[#allocation1] ss:$9 sm:$0xff] %v366_v16  ;;  %679 = vperm.xlu1 %928, %v590_v19   ;;  %v352_v16 = vpop.xlane.xlu0 %351 }
 0x18f   :  { %592 = vst [vmem:[#allocation1 + $0x1] ss:$9 sm:$0xff] %v454_v17  ;;  %v372_v17 = vadd.f32 %v1178_v46, %v352_v16  ;;  %v656_v46 = vpop.permute.xlu1 %655 }
 0x190   :  { %593 = vst [vmem:[#allocation1 + $0x2] ss:$9 sm:$0xff] %v455_v18 }
 0x191   :  { %594 = vst [vmem:[#allocation1 + $0x3] ss:$9 sm:$0xff] %v456_v20  ;;  %v496_v18 = vrot.slane %v372_v17, 1  ;;  %v497_v19 = vrot.slane %v372_v17, 2  ;;  %v498_v20 = vrot.slane %v372_v17, 3  ;;  %v502_v27 = vrot.slane %v372_v17, 7 }
 0x192   :  { %595 = vst [vmem:[#allocation1 + $0x4] ss:$9 sm:$0xff] %v457_v22 }
 0x193   :  { %596 = vst [vmem:[#allocation1 + $0x5] ss:$9 sm:$0xff] %v458_v23  ;;  %v499_v23 = vrot.slane %v372_v17, 4 }
 0x194   :  { %597 = vst [vmem:[#allocation1 + $0x6] ss:$9 sm:$0xff] %v459_v25  ;;  %v500_v25 = vrot.slane %v372_v17, 5 }
 0x195   :  { %598 = vst [vmem:[#allocation1 + $0x7] ss:$9 sm:$0xff] %v460_v26  ;;  %v501_v26 = vrot.slane %v372_v17, 6 }
 0x19c   :  { %v599_v31 = vld [vmem:[#allocation1] sm:$0xff] }
 0x19d   :  { %600 = vst [vmem:[#allocation1] ss:$9 sm:$0xff] %v367_v28  ;;  %682 = vperm.xlu0 %930, %v599_v31  }
 0x19e   :  { %601 = vst [vmem:[#allocation1 + $0x1] ss:$9 sm:$0xff] %v461_v29  ;;  %v659_v29 = vpop.permute.xlu2 %658 }
 0x19f   :  { %602 = vst [vmem:[#allocation1 + $0x2] ss:$9 sm:$0xff] %v462_v30 }
 0x1a0   :  { %603 = vst [vmem:[#allocation1 + $0x3] ss:$9 sm:$0xff] %v463_v32  ;;  %v702_v32 = vlaneseq }
 0x1a1   :  { %604 = vst [vmem:[#allocation1 + $0x4] ss:$9 sm:$0xff] %v464_v33 }
 0x1a2   :  { %605 = vst [vmem:[#allocation1 + $0x5] ss:$9 sm:$0xff] %v465_v34  ;;  %v1197_v33 = vand.u32 127, %v702_v32 }
 0x1a3   :  { %606 = vst [vmem:[#allocation1 + $0x6] ss:$9 sm:$0xff] %v466_v35 }
 0x1a4   :  { %607 = vst [vmem:[#allocation1 + $0x7] ss:$9 sm:$0xff] %v467_v36  ;;  %v709_v36 = vadd.s32 4294967280, %v1197_v33  ;;  %v705_v37 = vadd.s32 4294967288, %v1197_v33 }
 0x1a6   :  { %v665_v31 = vpop.permute.xlu2 %664 }
 0x1ab   :  { %v608_v41 = vld [vmem:[#allocation1] sm:$0xff] }
 0x1ac   :  { %609 = vst [vmem:[#allocation1] ss:$9 sm:$0xff] %v368_v38  ;;  %685 = vperm.xlu2 %929, %v608_v41   ;;  %v662_v38 = vpop.permute.xlu0 %661  ;;  %v717_v41 = vadd.s32 4294967264, %v1197_v33 }
 0x1ad   :  { %610 = vst [vmem:[#allocation1 + $0x1] ss:$9 sm:$0xff] %v468_v39  ;;  %v704_v39 = vperm.slane %v656_v46, %v1197_v33 }
 0x1ae   :  { %611 = vst [vmem:[#allocation1 + $0x2] ss:$9 sm:$0xff] %v469_v40  ;;  %v710_v40 = vperm.slane %v662_v38, %v709_v36 }
 0x1af   :  { %612 = vst [vmem:[#allocation1 + $0x3] ss:$9 sm:$0xff] %v470_v42  ;;  %v60_v42 = vld [vmem:[%s1343_s6 + $0x18] sm:$0xff] }
 0x1b0   :  { %613 = vst [vmem:[#allocation1 + $0x4] ss:$9 sm:$0xff] %v471_v43  ;;  %v59_v43 = vld [vmem:[%s1343_s6 + $0x10] sm:$0xff]  ;;  %916 = vmatpush.msra.mxu3 %v60_v42  ;;  %126 = vmatpush.msra.mxu0 %v60_v42  ;;  %v946_v42 = vld [vmem:[%s1338_s1 + $0x68] sm:$0xff] }
 0x1b1   :  { %614 = vst [vmem:[#allocation1 + $0x5] ss:$9 sm:$0xff] %v472_v44  ;;  %v706_v44 = vperm.slane %v659_v29, %v705_v37  ;;  %v1239_v29 = vshrl.u32 %v702_v32, 7 }
 0x1b2   :  { %615 = vst [vmem:[#allocation1 + $0x6] ss:$9 sm:$0xff] %v473_v45  ;;  %v713_v45 = vadd.s32 4294967272, %v1197_v33  ;;  %917 = vmatpush.msra.mxu3 %v59_v43  ;;  %127 = vmatpush.msra.mxu0 %v59_v43  ;;  %v947_v43 = vld [vmem:[%s1338_s1 + $0x20] sm:$0xff] }
 0x1b3   :  { %616 = vst [vmem:[#allocation1 + $0x7] ss:$9 sm:$0xff] %v474_v47  ;;  %v58_v47 = vld [vmem:[%s1343_s6 + $0x8] sm:$0xff]  ;;  %v708_v48 = vsel %vm707_vm2, %v706_v44, %v704_v39  ;;  %v948_v44 = vld [vmem:[%s1338_s1 + $0x70] sm:$0xff] }
 0x1b4   :  { %918 = vmatpush.msra.mxu3 %v58_v47  ;;  %128 = vmatpush.msra.mxu0 %v58_v47  ;;  %v950_v47 = vld [vmem:[%s1338_s1 + $0x78] sm:$0xff] }
 0x1ba   :  { %v617_v21 = vld [vmem:[#allocation1] sm:$0xff] }
 0x1bb   :  { %618 = vst [vmem:[#allocation1] ss:$9 sm:$0xff] %v369_v49  ;;  %688 = vperm.xlu1 %928, %v617_v21   ;;  %v671_v35 = vpop.permute.xlu2 %670 }
 0x1bc   :  { %619 = vst [vmem:[#allocation1 + $0x1] ss:$9 sm:$0xff] %v475_v50  ;;  %v712_v50 = vsel %vm711_vm3, %v710_v40, %v708_v48  ;;  %v944_v40 = vld [vmem:[%s1338_s1 + $0x60] sm:$0xff]  ;;  %v951_v48 = vld [vmem:[%s1338_s1 + $0x30] sm:$0xff] }
 0x1bd   :  { %620 = vst [vmem:[#allocation1 + $0x2] ss:$9 sm:$0xff] %v476_v51 }
 0x1be   :  { %621 = vst [vmem:[#allocation1 + $0x3] ss:$9 sm:$0xff] %v477_v52  ;;  %v725_v52 = vadd.s32 4294967248, %v1197_v33 }
 0x1bf   :  { %622 = vst [vmem:[#allocation1 + $0x4] ss:$9 sm:$0xff] %v478_v24  ;;  %v57_v24 = vld [vmem:[%s1343_s6] sm:$0xff] }
 0x1c0   :  { %623 = vst [vmem:[#allocation1 + $0x5] ss:$9 sm:$0xff] %v479_v53  ;;  %v714_v53 = vperm.slane %v665_v31, %v713_v45  ;;  %919 = vmatpush.msra.mxu3 %v57_v24  ;;  %129 = vmatpush.msra.mxu0 %v57_v24  ;;  %v942_v31 = vld [vmem:[%s1338_s1 + $0x58] sm:$0xff]  ;;  %v949_v45 = vld [vmem:[%s1338_s1 + $0x28] sm:$0xff] }
 0x1c1   :  { %624 = vst [vmem:[#allocation1 + $0x6] ss:$9 sm:$0xff] %v480_v54  ;;  %v721_v54 = vadd.s32 4294967256, %v1197_v33  ;;  %892 = vmatmul.msk.f32.vlgmr.msra.gmra.mxu3 %vm39_vm0, %v1069_v9  ;;  %883 = vmatmul.msk.f32.vlgmr.msra.gmra.mxu0 %vm39_vm0, %v1047_v5  ;;  %v745_v9 = vadd.s32 4294967208, %v1197_v33  ;;  %v749_v5 = vadd.s32 4294967200, %v1197_v33 }
 0x1c2   :  { %625 = vst [vmem:[#allocation1 + $0x7] ss:$9 sm:$0xff] %v481_v55  ;;  %v716_v55 = vsel %vm715_vm4, %v714_v53, %v712_v50  ;;  %v953_v50 = vld [vmem:[%s1338_s1 + $0x40] sm:$0xff]  ;;  %vm36_vm4 = vcmask 7168  }
 0x1c4   :  { %v668_v30 = vpop.permute.xlu1 %667 }
 0x1c5   :  { %v718_v51 = vperm.slane %v668_v30, %v717_v41  ;;  %v1244_v30 = vld [vmem:[%s1337_s0] ss:$0 sm:$0xff]  ;;  %v945_v41 = vld [vmem:[%s1338_s1 + $0x18] sm:$0xff] }
 0x1c6   :  { %vm770_vm3 = vcmp.eq.s32.totalorder %v1239_v29, %v1244_v30 }
 0x1c9   :  { %v626_v60 = vld [vmem:[#allocation1] sm:$0xff]  ;;  %893 = vmatmul.msk.f32.gmra.mxu3 %vm39_vm0, %v1080_v11  ;;  %884 = vmatmul.msk.f32.gmra.mxu0 %vm39_vm0, %v1054_v6  ;;  %v761_v11 = vadd.s32 4294967176, %v1197_v33 }
 0x1ca   :  { %627 = vst [vmem:[#allocation1] ss:$9 sm:$0xff] %v370_v57  ;;  %691 = vperm.xlu0 %930, %v626_v60   ;;  %v720_v57 = vsel %vm719_vm5, %v718_v51, %v716_v55  ;;  %v722_v60 = vperm.slane %v671_v35, %v721_v54  ;;  %v981_v51 = vmov -1e+30  }
 0x1cb   :  { %628 = vst [vmem:[#allocation1 + $0x1] ss:$9 sm:$0xff] %v482_v58 }
 0x1cc   :  { %629 = vst [vmem:[#allocation1 + $0x2] ss:$9 sm:$0xff] %v483_v59  ;;  %v733_v59 = vadd.s32 4294967232, %v1197_v33 }
 0x1cd   :  { %630 = vst [vmem:[#allocation1 + $0x3] ss:$9 sm:$0xff] %v484_v61  ;;  %v729_v61 = vadd.s32 4294967240, %v1197_v33 }
 0x1ce   :  { %631 = vst [vmem:[#allocation1 + $0x4] ss:$9 sm:$0xff] %v485_v62  ;;  %v737_v62 = vadd.s32 4294967224, %v1197_v33 }
 0x1cf   :  { %632 = vst [vmem:[#allocation1 + $0x5] ss:$9 sm:$0xff] %v486_v63  ;;  %v724_v63 = vsel %vm723_vm6, %v722_v60, %v720_v57 }
 0x1d0   :  { %633 = vst [vmem:[#allocation1 + $0x6] ss:$9 sm:$0xff] %v487_v0 }
 0x1d1   :  { %634 = vst [vmem:[#allocation1 + $0x7] ss:$9 sm:$0xff] %v488_v1  ;;  %894 = vmatmul.msk.f32.gmra.mxu3 %vm39_vm0, %v942_v31 }
 0x1d2   :  { %37 = vst.msk [vmem:[#allocation2] sm:$0xff] %vm36_vm4, %v981_v51 }
 0x1d8   :  { %v635_v10 = vld [vmem:[#allocation1] sm:$0xff] }
 0x1d9   :  { %694 = vperm.xlu2 %929, %v635_v10   ;;  %636 = vst [vmem:[#allocation1] ss:$9 sm:$0xff] %v371_v3  ;;  %v677_v21 = vpop.permute.xlu2 %676  ;;  %895 = vmatmul.msk.f32.gmra.mxu3 %vm39_vm0, %v944_v40  ;;  %v1305_v24 = vld [vmem:[#allocation2] sm:$0xff] }
 0x1da   :  { %637 = vst [vmem:[#allocation1 + $0x1] ss:$9 sm:$0xff] %v489_v4  ;;  %v730_v4 = vperm.slane %v677_v21, %v729_v61  ;;  %v982_v21 = vmov 0.0  }
 0x1db   :  { %638 = vst [vmem:[#allocation1 + $0x2] ss:$9 sm:$0xff] %v490_v7 }
 0x1dc   :  { %639 = vst [vmem:[#allocation1 + $0x3] ss:$9 sm:$0xff] %v491_v8  ;;  %v741_v8 = vadd.s32 4294967216, %v1197_v33 }
 0x1dd   :  { %640 = vst [vmem:[#allocation1 + $0x4] ss:$9 sm:$0xff] %v492_v12 }
 0x1de   :  { %641 = vst [vmem:[#allocation1 + $0x5] ss:$9 sm:$0xff] %v493_v13 }
 0x1df   :  { %642 = vst [vmem:[#allocation1 + $0x6] ss:$9 sm:$0xff] %v494_v14 }
 0x1e0   :  { %643 = vst [vmem:[#allocation1 + $0x7] ss:$9 sm:$0xff] %v495_v15 }
 0x1e1   :  { %896 = vmatmul.msk.f32.gmra.mxu3 %vm39_vm0, %v946_v42  ;;  %38 = vst.msk [vmem:[#allocation3] sm:$0xff] %vm36_vm4, %v982_v21 }
 0x1e2   :  { %v674_v34 = vpop.permute.xlu1 %673  ;;  %40 = vst.msk [vmem:[#allocation4] sm:$0xff] %vm39_vm0, %v982_v21 }
 0x1e3   :  { %v726_v58 = vperm.slane %v674_v34, %v725_v52 }
 0x1e5   :  { %v728_v1 = vsel %vm727_vm7, %v726_v58, %v724_v63 }
 0x1e6   :  { %v732_v10 = vsel %vm731_vm8, %v730_v4, %v728_v1 }
 0x1e7   :  { %v644_v22 = vld [vmem:[#allocation1] sm:$0xff] }
 0x1e8   :  { %697 = vperm.xlu1 %928, %v644_v22   ;;  %645 = vst [vmem:[#allocation1] ss:$9 sm:$0xff] %v372_v17 }
 0x1e9   :  { %646 = vst [vmem:[#allocation1 + $0x1] ss:$9 sm:$0xff] %v496_v18  ;;  %v757_v18 = vadd.s32 4294967184, %v1197_v33  ;;  %897 = vmatmul.msk.f32.gmra.mxu3 %vm39_vm0, %v948_v44  ;;  %v809_v30 = vld [vmem:[#allocation4] sm:$0xff] }
 0x1ea   :  { %647 = vst [vmem:[#allocation1 + $0x2] ss:$9 sm:$0xff] %v497_v19  ;;  %v753_v19 = vadd.s32 4294967192, %v1197_v33  ;;  %v943_v33 = vld [vmem:[%s1338_s1 + $0x10] sm:$0xff] }
 0x1eb   :  { %648 = vst [vmem:[#allocation1 + $0x3] ss:$9 sm:$0xff] %v498_v20  ;;  %885 = vmatmul.msk.f32.gmra.mxu0 %vm39_vm0, %v943_v33 }
 0x1ec   :  { %649 = vst [vmem:[#allocation1 + $0x4] ss:$9 sm:$0xff] %v499_v23 }
 0x1ed   :  { %650 = vst [vmem:[#allocation1 + $0x5] ss:$9 sm:$0xff] %v500_v25 }
 0x1ee   :  { %651 = vst [vmem:[#allocation1 + $0x6] ss:$9 sm:$0xff] %v501_v26 }
 0x1ef   :  { %652 = vst [vmem:[#allocation1 + $0x7] ss:$9 sm:$0xff] %v502_v27  ;;  %v373_v27 = vld [vmem:[%s1337_s0] sm:$0x1] }
 0x1f0   :  { %vm374_vm2 = vcmp.lt.s32.totalorder %v373_v27, 8 }
 0x1f1   :  { %898 = vmatmul.msk.f32.gmra.mxu3 %vm39_vm0, %v950_v47 }
 0x1f3   :  { %886 = vmatmul.msk.f32.gmra.mxu0 %vm39_vm0, %v945_v41 }
 0x1f6   :  { %v653_v28 = vld [vmem:[#allocation1] sm:$0xff] }
 0x1f7   :  { %700 = vperm.xlu0 %930, %v653_v28  }
 0x1fb   :  { %887 = vmatmul.msk.f32.gmra.mxu0 %vm39_vm0, %v947_v43 }
 0x200   :  { %v680_v49 = vpop.permute.xlu1 %679 }
 0x201   :  { %v734_v3 = vperm.slane %v680_v49, %v733_v59  ;;  %v952_v49 = vld [vmem:[%s1338_s1 + $0x38] sm:$0xff] }
 0x203   :  { %v736_v13 = vsel %vm735_vm9, %v734_v3, %v732_v10  ;;  %888 = vmatmul.msk.f32.gmra.mxu0 %vm39_vm0, %v949_v45 }
 0x206   :  { %v686_v2 = vpop.permute.xlu2 %685 }
 0x207   :  { %v742_v16 = vperm.slane %v686_v2, %v741_v8 }
 0x20b   :  { %889 = vmatmul.msk.f32.gmra.mxu0 %vm39_vm0, %v951_v48 }
 0x20f   :  { %v683_v56 = vpop.permute.xlu0 %682 }
 0x210   :  { %v738_v7 = vperm.slane %v683_v56, %v737_v62 }
 0x212   :  { %v740_v14 = vsel %vm739_vm10, %v738_v7, %v736_v13 }
 0x213   :  { %v744_v23 = vsel %vm743_vm11, %v742_v16, %v740_v14  ;;  %890 = vmatmul.msk.f32.gmra.mxu0 %vm39_vm0, %v952_v49 }
 0x21b   :  { %891 = vmatmul.msk.f32.gmra.mxu0 %vm39_vm0, %v953_v50 }
 0x22d   :  { %v689_v0 = vpop.permute.xlu1 %688 }
 0x22e   :  { %v746_v15 = vperm.slane %v689_v0, %v745_v9  ;;  %v935_v0 = vld [vmem:[%s1344_s7] ss:$0 sm:$0xff]  ;;  %s983_s7 = smov [#allocation6]  }
 0x22f   :  { %s872_s9 = sshll.u32 %s983_s7, 4  ;;  %s873_s9 = int_to_ptr.vmem [resolvable:$true] %s872_s9 }
 0x230   :  { %v748_v25 = vsel %vm747_vm12, %v746_v15, %v744_v23 }
 0x233   :  { %v695_v22 = vpop.permute.xlu2 %694 }
 0x234   :  { %v754_v28 = vperm.slane %v695_v22, %v753_v19 }
 0x23c   :  { %v692_v12 = vpop.permute.xlu0 %691 }
 0x23d   :  { %v750_v17 = vperm.slane %v692_v12, %v749_v5 }
 0x23e   :  { %v131_v58 = vpop.f32.mrf.mxu0 }
 0x23f   :  { %v752_v26 = vsel %vm751_vm13, %v750_v17, %v748_v25  ;;  %v132_v40 = vadd.f32 %v935_v0, %v131_v58 }
 0x240   :  { %v756_v34 = vsel %vm755_vm14, %v754_v28, %v752_v26 }
 0x241   :  { %v179_v43 = vmax.f32 %v132_v40, 0.0 }
 0x244   :  { %v158_v52 = vpop.f32.mrf.mxu3 }
 0x245   :  { %v159_v15 = vadd.f32 %v935_v0, %v158_v52 }
 0x246   :  { %v134_v60 = vpop.f32.mrf.mxu0 }
 0x247   :  { %v188_v19 = vmax.f32 %v159_v15, 0.0 }
 0x24c   :  { %v161_v54 = vpop.f32.mrf.mxu3 }
 0x24d   :  { %v162_v13 = vadd.f32 %v935_v0, %v161_v54 }
 0x24f   :  { %v189_v17 = vmax.f32 %v162_v13, 0.0 }
 0x254   :  { %v164_v57 = vpop.f32.mrf.mxu3 }
 0x255   :  { %v165_v10 = vadd.f32 %v935_v0, %v164_v57 }
 0x257   :  { %v190_v16 = vmax.f32 %v165_v10, 0.0 }
 0x25a   :  { %v698_v20 = vpop.permute.xlu1 %697 }
 0x25b   :  { %v758_v6 = vperm.slane %v698_v20, %v757_v18 }
 0x25c   :  { %v167_v59 = vpop.f32.mrf.mxu3 }
 0x25d   :  { %v760_v35 = vsel %vm759_vm15, %v758_v6, %v756_v34  ;;  %v168_v9 = vadd.f32 %v935_v0, %v167_v59 }
 0x25f   :  { %v191_v14 = vmax.f32 %v168_v9, 0.0 }
 0x264   :  { %v170_v61 = vpop.f32.mrf.mxu3 }
 0x265   :  { %v171_v3 = vadd.f32 %v935_v0, %v170_v61  ;;  %v802_v61 = vld [vmem:[#allocation3] sm:$0xff] }
 0x267   :  { %v192_v12 = vmax.f32 %v171_v3, 0.0 }
 0x268   :  { %v137_v62 = vpop.f32.mrf.mxu0 }
 0x269   :  { %v701_v46 = vpop.permute.xlu0 %700 }
 0x26a   :  { %v762_v32 = vperm.slane %v701_v46, %v761_v11 }
 0x26c   :  { %v764_v36 = vsel %vm763_vm1, %v762_v32, %v760_v35  ;;  %v173_v63 = vpop.f32.mrf.mxu3  ;;  %v138_v35 = vadd.f32 %v935_v0, %v137_v62 }
 0x26d   :  { %v1254_v37 = vsel %vm374_vm2, %v764_v36, -1e+30  ;;  %v174_v1 = vadd.f32 %v935_v0, %v173_v63 }
 0x26e   :  { %v772_v38 = vperm.slane %v1254_v37, 0  ;;  %v181_v41 = vmax.f32 %v138_v35, 0.0 }
 0x26f   :  { %v193_v8 = vmax.f32 %v174_v1, 0.0 }
 0x270   :  { %v774_v39 = vsel %vm770_vm3, %v772_v38, -1e+30  ;;  %v140_v7 = vpop.f32.mrf.mxu0  ;;  %v135_v38 = vadd.f32 %v935_v0, %v134_v60 }
 0x271   :  { %775 = vmax.xlane.f32.xlu2 %v774_v39  ;;  %v141_v34 = vadd.f32 %v935_v0, %v140_v7 }
 0x272   :  { %v180_v42 = vmax.f32 %v135_v38, 0.0 }
 0x273   :  { %v182_v39 = vmax.f32 %v141_v34, 0.0 }
 0x274   :  { %v176_v2 = vpop.f32.mrf.mxu3 }
 0x275   :  { %v177_v4 = vadd.f32 %v935_v0, %v176_v2 }
 0x277   :  { %v194_v5 = vmax.f32 %v177_v4, 0.0 }
 0x278   :  { %v143_v18 = vpop.f32.mrf.mxu0 }
 0x279   :  { %816 = vmatpush.msrb.mxu2 %v194_v5  ;;  %v144_v31 = vadd.f32 %v935_v0, %v143_v18 }
 0x27b   :  { %817 = vmatpush.msrb.mxu2 %v193_v8  ;;  %v183_v36 = vmax.f32 %v144_v31, 0.0 }
 0x27d   :  { %818 = vmatpush.msrb.mxu2 %v192_v12 }
 0x27f   :  { %819 = vmatpush.msrb.mxu2 %v191_v14 }
 0x280   :  { %v146_v20 = vpop.f32.mrf.mxu0 }
 0x281   :  { %820 = vmatpush.msrb.mxu2 %v190_v16  ;;  %v147_v27 = vadd.f32 %v935_v0, %v146_v20 }
 0x283   :  { %821 = vmatpush.msrb.mxu2 %v189_v17  ;;  %v184_v32 = vmax.f32 %v147_v27, 0.0 }
 0x285   :  { %822 = vmatpush.msrb.mxu2 %v188_v19 }
 0x288   :  { %v149_v22 = vpop.f32.mrf.mxu0 }
 0x289   :  { %v150_v26 = vadd.f32 %v935_v0, %v149_v22 }
 0x28b   :  { %v185_v33 = vmax.f32 %v150_v26, 0.0 }
 0x290   :  { %v152_v23 = vpop.f32.mrf.mxu0 }
 0x291   :  { %v153_v25 = vadd.f32 %v935_v0, %v152_v23 }
 0x293   :  { %v186_v28 = vmax.f32 %v153_v25, 0.0 }
 0x298   :  { %v155_v11 = vpop.f32.mrf.mxu0 }
 0x299   :  { %v156_v6 = vadd.f32 %v935_v0, %v155_v11 }
 0x29b   :  { %v187_v46 = vmax.f32 %v156_v6, 0.0 }
 0x29d   :  { %823 = vmatpush.msrb.mxu2 %v187_v46 }
 0x29f   :  { %824 = vmatpush.msrb.mxu2 %v186_v28 }
 0x2a1   :  { %825 = vmatpush.msrb.mxu2 %v185_v33 }
 0x2a3   :  { %826 = vmatpush.msrb.mxu2 %v184_v32 }
 0x2a5   :  { %827 = vmatpush.msrb.mxu2 %v183_v36 }
 0x2a7   :  { %828 = vmatpush.msrb.mxu2 %v182_v39 }
 0x2a9   :  { %829 = vmatpush.msrb.mxu2 %v181_v41 }
 0x2ab   :  { %830 = vmatpush.msrb.mxu2 %v180_v42 }
 0x2ad   :  { %831 = vmatpush.msrb.mxu2 %v179_v43 }
 0x2e4   :  { %v776_v53 = vpop.xlane.xlu2 %775 }
 0x2e5   :  { %v1308_v55 = vmax.f32 %v1305_v24, %v776_v53 }
 0x2e7   :  { %v779_v56 = vsub.f32 %v1305_v24, %v1308_v55  ;;  %838 = vst.msk [vmem:[#allocation2] sm:$0xff] %vm36_vm4, %v1308_v55  ;;  %784 = vperm.xlu1 %928, %v1308_v55  }
 0x2e9   :  { %v780_v60 = vmul.f32 1.442695, %v779_v56 }
 0x359   :  { %v785_v44 = vpop.permute.xlu1 %784 }
 0x35a   :  { %v787_v45 = vsel %vm770_vm3, %v785_v44, -1e+30 }
 0x35b   :  { %v788_v47 = vrot.slane %v787_v45, 4 }
 0x35d   :  { %v789_v48 = vmax.f32 %v787_v45, %v788_v47 }
 0x35f   :  { %v790_v49 = vrot.slane %v789_v48, 2 }
 0x361   :  { %v791_v50 = vmax.f32 %v789_v48, %v790_v49 }
 0x363   :  { %v792_v51 = vrot.slane %v791_v50, 1 }
 0x365   :  { %v793_v21 = vmax.f32 %v791_v50, %v792_v51 }
 0x367   :  { %v794_v52 = vsub.f32 %v1254_v37, %v793_v21 }
 0x369   :  { %v795_v53 = vmin.f32 %v794_v52, 0.0 }
 0x36b   :  { %v796_v54 = vmul.f32 1.442695, %v795_v53 }
 0x36d   :  { %936 = vpow2.f32 %v796_v54 }
 0x36e   :  { %938 = vpow2.f32 %v780_v60 }
 0x373   :  { %v937_v57 = vpop.eup %936 }
 0x374   :  { %v799_v58 = vperm.slane %v937_v57, 0  ;;  %v939_v37 = vpop.eup %938 }
 0x375   :  { %v803_v62 = vmul.f32 %v939_v37, %v802_v61 }
 0x376   :  { %915 = vmatmul.msk.f32.vlgmr.msrb.gmra.mxu2 %vm770_vm3, %v799_v58  ;;  %v801_v59 = vsel %vm770_vm3, %v799_v58, 0.0 }
 0x377   :  { %804 = vadd.xlane.f32.xlu0 %v801_v59 }
 0x3ea   :  { %v805_v63 = vpop.xlane.xlu0 %804 }
 0x3eb   :  { %v806_v0 = vadd.f32 %v805_v63, %v803_v62 }
 0x3ed   :  { %808 = vst.msk [vmem:[#allocation3] sm:$0xff] %vm36_vm4, %v806_v0 }
 0x3f4   :  { %v842_v1 = vld [vmem:[#allocation3] sm:$0xff] }
 0x3f5   :  { %vm843_vm5 = vcmp.gt.f32.partialorder %v842_v1, 0.0 }
 0x3f6   :  { %v844_v2 = vsel %vm843_vm5, %v842_v1, 1.0 }
 0x3f7   :  { %848 = vperm.xlu1 %928, %v844_v2  }
 0x3f9   :  { %v833_v56 = vpop.f32.mrf.mxu2 }
 0x3ff   :  { %812 = vperm.xlu1 %928, %v939_v37  }
 0x469   :  { %v849_v29 = vpop.permute.xlu1 %848 }
 0x46a   :  { %940 = vrcp.f32 %v849_v29  ;;  %v862_v10 = vand.u32 2147483648, %v849_v29  ;;  %vm856_vm7 = vweird.f32 %v849_v29  ;;  %v860_v12 = vand.u32 2147483647, %v849_v29 }
 0x46c   :  { %v863_v14 = vor.u32 1.1754944e-38, %v862_v10  ;;  %vm861_vm9 = vcmp.eq.f32.partialorder %v860_v12, 8.507059e+37 }
 0x470   :  { %v941_v3 = vpop.eup %940 }
 0x471   :  { %v852_v4 = vmul.f32 %v941_v3, %v849_v29  ;;  %v813_v24 = vpop.permute.xlu1 %812  ;;  %vm857_vm6 = vweird.f32 %v941_v3 }
 0x472   :  { %v815_v55 = vmul.f32 %v813_v24, %v809_v30  ;;  %vm858_vm8 = vmor %vm856_vm7, %vm857_vm6 }
 0x473   :  { %v853_v7 = vsub.f32 1.0, %v852_v4 }
 0x474   :  { %v836_v9 = vadd.f32 %v833_v56, %v815_v55 }
 0x475   :  { %v854_v8 = vmul.f32 %v941_v3, %v853_v7 }
 0x476   :  { %837 = vst.msk [vmem:[#allocation4] sm:$0xff] %vm39_vm0, %v836_v9 }
 0x477   :  { %v855_v5 = vadd.f32 %v941_v3, %v854_v8 }
 0x479   :  { %v859_v13 = vsel %vm858_vm8, %v941_v3, %v855_v5 }
 0x47a   :  { %v864_v16 = vsel %vm861_vm9, %v863_v14, %v859_v13 }
 0x47d   :  { %v845_v15 = vld [vmem:[#allocation4] sm:$0xff] }
 0x47e   :  { %v865_v17 = vmul.f32 %v864_v16, %v845_v15 }
 0x480   :  { %866 = vst.msk [vmem:[#allocation6] sm:$0xff] %vm39_vm0, %v865_v17 }
 0x481   :  { %877 = dma.vmem_to_hbm [thread:$0]  %s873_s9, 128, %s875_s12, [#allocation7]  }
 0x482   :  { %978 = dma.done.wait [#allocation7], 128  }
 0x483   :  { %979 = vsyncadd [#allocation7], 4294967168 }
 0x484   :  { %882 = vsyncpa [#allocation7], 1 }

</bundles_post_ra>
